<compile_context>
chip_gen: v6e
topology: v6e:2x2x1
jax: 0.10.0
libtpu: 0.0.40
codegen_flags: <defaults>
</compile_context>

<pallas_src>
import math
from functools import partial

import jax
import jax.numpy as jnp
from jax import lax
from jax.experimental import pallas as pl
from jax.experimental.pallas import tpu as pltpu

REG_MAX = 16
EPS = 1e-7
MAX_TILE_L = 2048      # anchors per grid step (lane axis); multiple of 128


def _atan(x):
    # TODO(synk): jnp.arctan lowering in Mosaic is not guaranteed; use 3
    # half-angle reductions + odd degree-9 polynomial (abs error ~2e-8).
    y = x
    for _ in range(3):
        y = y * pl.reciprocal(1.0 + jnp.sqrt(1.0 + y * y), approx=True)
    y2 = y * y
    p = y * (1.0 + y2 * (-1.0 / 3.0 + y2 * (1.0 / 5.0
             + y2 * (-1.0 / 7.0 + y2 * (1.0 / 9.0)))))
    return 8.0 * p


def _make_bbox_loss_kernel(n_valid, tile_l):
    """Kernel over one tile of `tile_l` anchors (anchors on the lane axis)."""
    four_over_pi2 = 4.0 / (math.pi ** 2)

    def kernel(pd_ref, pb_ref, ap_ref, tb_ref, w_ref, iou_ref, dfl_ref):
        pd = pd_ref[...]      # (4*REG_MAX, TL) distribution logits
        pb = pb_ref[...]      # (4, TL) predicted boxes, xyxy
        tb = tb_ref[...]      # (4, TL) target boxes, xyxy
        ap = ap_ref[...]      # (2, TL) anchor points
        w = w_ref[...]        # (1, TL) target_scores.sum(-1) * fg_mask

        # Ragged-tail + background mask. Index-based, so garbage from the
        # clamped boundary-block DMA can never reach a valid output lane.
        col = (pl.program_id(0) * tile_l
               + lax.broadcasted_iota(jnp.int32, (1, tile_l), 1))
        valid = jnp.logical_and(col < n_valid, w > 0.0)

        b1_x1 = pb[0:1, :]; b1_y1 = pb[1:2, :]; b1_x2 = pb[2:3, :]; b1_y2 = pb[3:4, :]
        b2_x1 = tb[0:1, :]; b2_y1 = tb[1:2, :]; b2_x2 = tb[2:3, :]; b2_y2 = tb[3:4, :]

        # ---- CIoU (bbox_iou, xywh=False, CIoU=True) ----
        w1 = b1_x2 - b1_x1
        h1 = b1_y2 - b1_y1 + EPS
        w2 = b2_x2 - b2_x1
        h2 = b2_y2 - b2_y1 + EPS
        inter = (jnp.maximum(jnp.minimum(b1_x2, b2_x2) - jnp.maximum(b1_x1, b2_x1), 0.0)
                 * jnp.maximum(jnp.minimum(b1_y2, b2_y2) - jnp.maximum(b1_y1, b2_y1), 0.0))
        union = w1 * h1 + w2 * h2 - inter + EPS
        iou = inter * pl.reciprocal(union, approx=True)
        cw = jnp.maximum(b1_x2, b2_x2) - jnp.minimum(b1_x1, b2_x1)
        ch = jnp.maximum(b1_y2, b2_y2) - jnp.minimum(b1_y1, b2_y1)
        c2 = cw * cw + ch * ch + EPS
        rho2 = ((b2_x1 + b2_x2 - b1_x1 - b1_x2) ** 2
                + (b2_y1 + b2_y2 - b1_y1 - b1_y2) ** 2) * 0.25
        # One atan instead of two: atan(w2/h2) - atan(w1/h1)
        #   = atan((w2*h1 - w1*h2) / (h1*h2 + w1*w2)), valid since w,h >= 0.
        atan_arg = (w2 * h1 - w1 * h2) * pl.reciprocal(h1 * h2 + w1 * w2, approx=True)
        d_atan = _atan(atan_arg)
        v = four_over_pi2 * d_atan * d_atan
        alpha = v * pl.reciprocal(v - iou + (1.0 + EPS), approx=True)
        ciou = iou - (rho2 * pl.reciprocal(c2, approx=True) + v * alpha)
        iou_ref[...] = jnp.where(valid, (1.0 - ciou) * w, 0.0)

        # ---- DFL (bbox2dist + DFLoss), fused over all 4*REG_MAX bins ----
        ax = ap[0:1, :]
        ay = ap[1:2, :]
        ltrb = jnp.concatenate([ax - b2_x1, ay - b2_y1, b2_x2 - ax, b2_y2 - ay],
                               axis=0)                        # (4, TL)
        tgt = jnp.clip(ltrb, 0.0, REG_MAX - 1 - 0.01)
        tl_f = jnp.floor(tgt)                                 # integer-valued f32
        wl = (tl_f + 1.0) - tgt
        wr = 1.0 - wl
        tl_i = tl_f.astype(jnp.int32)[:, None, :]             # (4, 1, TL)

        pd3 = pd.reshape(4, REG_MAX, tile_l)                  # (4, 16, TL)
        mx = jnp.max(pd3, axis=1)                             # (4, TL)
        ex = jnp.exp(pd3 - mx[:, None, :])
        lse = mx + jnp.log(jnp.sum(ex, axis=1))               # (4, TL)
        bins = lax.broadcasted_iota(jnp.int32, (4, REG_MAX, tile_l), 1)
        pick_l = jnp.sum(jnp.where(bins == tl_i, pd3, 0.0), axis=1)       # (4, TL)
        pick_r = jnp.sum(jnp.where(bins == tl_i + 1, pd3, 0.0), axis=1)   # (4, TL)
        dfl = jnp.sum((lse - pick_l) * wl + (lse - pick_r) * wr,
                      axis=0, keepdims=True) * 0.25           # (1, TL) mean over l,t,r,b
        dfl_ref[...] = jnp.where(valid, dfl * w, 0.0)

    return kernel


@partial(jax.jit, static_argnames=("tile_l",))
def bbox_loss(pred_dist, pred_bboxes, anchor_points, target_bboxes,
              target_scores, target_scores_sum, fg_mask, tile_l=None):
    B, A, _ = pred_bboxes.shape
    N = B * A
    f32 = jnp.float32

    if tile_l is None:
        tile_l = min(MAX_TILE_L, ((N + 127) // 128) * 128)
    n_tiles = -(-N // tile_l)
    out_lanes = n_tiles * tile_l

    # Anchors on the lane (last) axis; the tiny feature axis on sublanes.
    pd_t = pred_dist.astype(f32).reshape(N, 4 * REG_MAX).T        # (64, N)
    pb_t = pred_bboxes.astype(f32).reshape(N, 4).T                # (4, N)
    tb_t = target_bboxes.astype(f32).reshape(N, 4).T              # (4, N)
    ap_t = jnp.tile(anchor_points.astype(f32).T, (1, B))          # (2, N): col n -> anchor n % A
    w_t = (jnp.sum(target_scores.astype(f32), axis=-1)
           * fg_mask.astype(f32)).reshape(1, N)                   # (1, N)

    kernel = _make_bbox_loss_kernel(N, tile_l)
    iou_part, dfl_part = pl.pallas_call(
        kernel,
        out_shape=(jax.ShapeDtypeStruct((1, out_lanes), f32),
                   jax.ShapeDtypeStruct((1, out_lanes), f32)),
        grid=(n_tiles,),
        in_specs=[
            pl.BlockSpec((4 * REG_MAX, tile_l), lambda i: (0, i)),
            pl.BlockSpec((4, tile_l), lambda i: (0, i)),
            pl.BlockSpec((2, tile_l), lambda i: (0, i)),
            pl.BlockSpec((4, tile_l), lambda i: (0, i)),
            pl.BlockSpec((1, tile_l), lambda i: (0, i)),
        ],
        out_specs=(pl.BlockSpec((1, tile_l), lambda i: (0, i)),
                   pl.BlockSpec((1, tile_l), lambda i: (0, i))),
        compiler_params=pltpu.CompilerParams(
            dimension_semantics=("parallel",)),
    )(pd_t, pb_t, ap_t, tb_t, w_t)

    tss = jnp.asarray(target_scores_sum, f32)
    return jnp.sum(iou_part) / tss, jnp.sum(dfl_part) / tss


def _ref_bbox_loss(pred_dist, pred_bboxes, anchor_points, target_bboxes,
                   target_scores, target_scores_sum, fg_mask):
    """Pure-JAX reference mirroring the PyTorch forward."""
    f32 = jnp.float32
    pb = pred_bboxes.astype(f32)
    tb = target_bboxes.astype(f32)
    ap = anchor_points.astype(f32)
    mask = fg_mask.astype(f32)[..., None]
    weight = jnp.sum(target_scores.astype(f32), -1, keepdims=True)

    b1_x1, b1_y1, b1_x2, b1_y2 = jnp.split(pb, 4, axis=-1)
    b2_x1, b2_y1, b2_x2, b2_y2 = jnp.split(tb, 4, axis=-1)
    w1, h1 = b1_x2 - b1_x1, b1_y2 - b1_y1 + EPS
    w2, h2 = b2_x2 - b2_x1, b2_y2 - b2_y1 + EPS
    inter = (jnp.maximum(jnp.minimum(b1_x2, b2_x2) - jnp.maximum(b1_x1, b2_x1), 0)
             * jnp.maximum(jnp.minimum(b1_y2, b2_y2) - jnp.maximum(b1_y1, b2_y1), 0))
    union = w1 * h1 + w2 * h2 - inter + EPS
    iou = inter / union
    cw = jnp.maximum(b1_x2, b2_x2) - jnp.minimum(b1_x1, b2_x1)
    ch = jnp.maximum(b1_y2, b2_y2) - jnp.minimum(b1_y1, b2_y1)
    c2 = cw ** 2 + ch ** 2 + EPS
    rho2 = ((b2_x1 + b2_x2 - b1_x1 - b1_x2) ** 2
            + (b2_y1 + b2_y2 - b1_y1 - b1_y2) ** 2) / 4
    v = (4 / math.pi ** 2) * (jnp.arctan(w2 / h2) - jnp.arctan(w1 / h1)) ** 2
    alpha = v / (v - iou + (1 + EPS))
    ciou = iou - (rho2 / c2 + v * alpha)
    loss_iou = jnp.sum(mask * (1.0 - ciou) * weight) / target_scores_sum

    ax, ay = ap[..., 0:1], ap[..., 1:2]
    ltrb = jnp.concatenate([ax - b2_x1, ay - b2_y1, b2_x2 - ax, b2_y2 - ay], -1)
    tgt = jnp.clip(ltrb, 0.0, REG_MAX - 1 - 0.01)
    tl = jnp.floor(tgt)
    wl = tl + 1.0 - tgt
    wr = 1.0 - wl
    logits = pred_dist.astype(f32).reshape(*tgt.shape, REG_MAX)
    logp = jax.nn.log_softmax(logits, axis=-1)
    tl_i = tl.astype(jnp.int32)
    ce_l = -jnp.take_along_axis(logp, tl_i[..., None], axis=-1)[..., 0]
    ce_r = -jnp.take_along_axis(logp, (tl_i + 1)[..., None], axis=-1)[..., 0]
    dfl = jnp.mean(ce_l * wl + ce_r * wr, axis=-1, keepdims=True)
    loss_dfl = jnp.sum(mask * dfl * weight) / target_scores_sum
    return loss_iou, loss_dfl


def _make_inputs(key, B, A, C):
    k1, k2, k3, k4, k5, k6 = jax.random.split(key, 6)
    anchor_points = jax.random.uniform(k1, (A, 2), minval=2.0, maxval=14.0)
    off = jax.random.uniform(k2, (B, A, 4), minval=0.5, maxval=8.0)
    target_bboxes = jnp.concatenate(
        [anchor_points[None] - off[..., :2], anchor_points[None] + off[..., 2:]], -1)
    noise = jax.random.uniform(k3, (B, A, 4), minval=-0.5, maxval=0.5)
    pred_bboxes = target_bboxes + noise
    pred_dist = jax.random.normal(k4, (B, A, 4 * REG_MAX))
    target_scores = jax.random.uniform(k5, (B, A, C))
    fg_mask = jax.random.bernoulli(k6, 0.6, (B, A))
    target_scores_sum = jnp.maximum(jnp.sum(target_scores), 1.0)
    return (pred_dist, pred_bboxes, anchor_points, target_bboxes,
            target_scores, target_scores_sum, fg_mask)


if __name__ == "__main__":
    # Tolerances: approx EUP reciprocals contribute <~5e-4 abs error worst-case.
    RTOL, ATOL = 1e-3, 2e-3

    # Main case: B=2, A=128 anchors, C=8 classes (N=256 -> one 256-lane tile).
    args = _make_inputs(jax.random.PRNGKey(0), 2, 128, 8)
    loss_iou, loss_dfl = bbox_loss(*args)
    jax.block_until_ready((loss_iou, loss_dfl))
    ref_iou, ref_dfl = _ref_bbox_loss(*args)
    assert jnp.allclose(loss_iou, ref_iou, rtol=RTOL, atol=ATOL), (loss_iou, ref_iou)
    assert jnp.allclose(loss_dfl, ref_dfl, rtol=RTOL, atol=ATOL), (loss_dfl, ref_dfl)

    # Ragged multi-tile case: N=320 with 256-lane tiles (2 tiles, last partial,
    # exercises the in-kernel lane masking instead of wrapper padding).
    args2 = _make_inputs(jax.random.PRNGKey(1), 2, 160, 8)
    li2, ld2 = bbox_loss(*args2, tile_l=256)
    jax.block_until_ready((li2, ld2))
    ri2, rd2 = _ref_bbox_loss(*args2)
    assert jnp.allclose(li2, ri2, rtol=RTOL, atol=ATOL), (li2, ri2)
    assert jnp.allclose(ld2, rd2, rtol=RTOL, atol=ATOL), (ld2, rd2)

    print("KERNEL_OK")
</pallas_src>

<mosaic_0001>
module attributes {stable_mosaic.version = 11 : i64} {
  func.func @kernel(%arg0: i32, %arg1: memref<64x256xf32, #tpu.memory_space<vmem>>, %arg2: memref<4x256xf32, #tpu.memory_space<vmem>>, %arg3: memref<2x256xf32, #tpu.memory_space<vmem>>, %arg4: memref<4x256xf32, #tpu.memory_space<vmem>>, %arg5: memref<1x256xf32, #tpu.memory_space<vmem>>, %arg6: memref<1x256xf32, #tpu.memory_space<vmem>>, %arg7: memref<1x256xf32, #tpu.memory_space<vmem>>) attributes {dimension_semantics = [#tpu.dimension_semantics<parallel>], iteration_bounds = array<i64: 1>, scalar_prefetch = 0 : i64, scratch_operands = 0 : i64, tpu.core_type = #tpu.core_type<tc>, window_params = [{transform_indices = @transform_0, window_bounds = array<i64: 64, 256>}, {transform_indices = @transform_1, window_bounds = array<i64: 4, 256>}, {transform_indices = @transform_2, window_bounds = array<i64: 2, 256>}, {transform_indices = @transform_3, window_bounds = array<i64: 4, 256>}, {transform_indices = @transform_4, window_bounds = array<i64: 1, 256>}, {transform_indices = @transform_5, window_bounds = array<i64: 1, 256>}, {transform_indices = @transform_6, window_bounds = array<i64: 1, 256>}]} {
    %c0 = arith.constant 0 : index
    %c0_0 = arith.constant 0 : index
    %0 = vector.load %arg1[%c0, %c0_0] : memref<64x256xf32, #tpu.memory_space<vmem>>, vector<64x256xf32>
    %c0_1 = arith.constant 0 : index
    %c0_2 = arith.constant 0 : index
    %1 = vector.load %arg2[%c0_1, %c0_2] : memref<4x256xf32, #tpu.memory_space<vmem>>, vector<4x256xf32>
    %c0_3 = arith.constant 0 : index
    %c0_4 = arith.constant 0 : index
    %2 = vector.load %arg4[%c0_3, %c0_4] : memref<4x256xf32, #tpu.memory_space<vmem>>, vector<4x256xf32>
    %c0_5 = arith.constant 0 : index
    %c0_6 = arith.constant 0 : index
    %3 = vector.load %arg3[%c0_5, %c0_6] : memref<2x256xf32, #tpu.memory_space<vmem>>, vector<2x256xf32>
    %c0_7 = arith.constant 0 : index
    %c0_8 = arith.constant 0 : index
    %4 = vector.load %arg5[%c0_7, %c0_8] : memref<1x256xf32, #tpu.memory_space<vmem>>, vector<1x256xf32>
    %c256_i32 = arith.constant 256 : i32
    %5 = arith.muli %arg0, %c256_i32 : i32
    %6 = tpu.iota {dimensions = array<i32: 1>} : vector<1x256xi32>
    %7 = vector.broadcast %5 : i32 to vector<1x256xi32>
    %8 = arith.addi %7, %6 : vector<1x256xi32>
    %c256_i32_9 = arith.constant 256 : i32
    %9 = vector.broadcast %c256_i32_9 : i32 to vector<1x256xi32>
    %10 = arith.cmpi slt, %8, %9 : vector<1x256xi32>
    %cst = arith.constant 0.000000e+00 : f32
    %11 = vector.broadcast %cst : f32 to vector<1x256xf32>
    %12 = arith.cmpf ogt, %4, %11 : vector<1x256xf32>
    %13 = arith.andi %10, %12 : vector<1x256xi1>
    %14 = vector.extract_strided_slice %1 {offsets = [0, 0], sizes = [1, 256], strides = [1, 1]} : vector<4x256xf32> to vector<1x256xf32>
    %15 = vector.extract_strided_slice %1 {offsets = [1, 0], sizes = [1, 256], strides = [1, 1]} : vector<4x256xf32> to vector<1x256xf32>
    %16 = vector.extract_strided_slice %1 {offsets = [2, 0], sizes = [1, 256], strides = [1, 1]} : vector<4x256xf32> to vector<1x256xf32>
    %17 = vector.extract_strided_slice %1 {offsets = [3, 0], sizes = [1, 256], strides = [1, 1]} : vector<4x256xf32> to vector<1x256xf32>
    %18 = vector.extract_strided_slice %2 {offsets = [0, 0], sizes = [1, 256], strides = [1, 1]} : vector<4x256xf32> to vector<1x256xf32>
    %19 = vector.extract_strided_slice %2 {offsets = [1, 0], sizes = [1, 256], strides = [1, 1]} : vector<4x256xf32> to vector<1x256xf32>
    %20 = vector.extract_strided_slice %2 {offsets = [2, 0], sizes = [1, 256], strides = [1, 1]} : vector<4x256xf32> to vector<1x256xf32>
    %21 = vector.extract_strided_slice %2 {offsets = [3, 0], sizes = [1, 256], strides = [1, 1]} : vector<4x256xf32> to vector<1x256xf32>
    %22 = arith.subf %16, %14 : vector<1x256xf32>
    %23 = arith.subf %17, %15 : vector<1x256xf32>
    %cst_10 = arith.constant 1.000000e-07 : f32
    %24 = vector.broadcast %cst_10 : f32 to vector<1x256xf32>
    %25 = arith.addf %23, %24 : vector<1x256xf32>
    %26 = arith.subf %20, %18 : vector<1x256xf32>
    %27 = arith.subf %21, %19 : vector<1x256xf32>
    %cst_11 = arith.constant 1.000000e-07 : f32
    %28 = vector.broadcast %cst_11 : f32 to vector<1x256xf32>
    %29 = arith.addf %27, %28 : vector<1x256xf32>
    %30 = arith.minimumf %16, %20 : vector<1x256xf32>
    %31 = arith.maximumf %14, %18 : vector<1x256xf32>
    %32 = arith.subf %30, %31 : vector<1x256xf32>
    %cst_12 = arith.constant 0.000000e+00 : f32
    %33 = vector.broadcast %cst_12 : f32 to vector<1x256xf32>
    %34 = arith.maximumf %32, %33 : vector<1x256xf32>
    %35 = arith.minimumf %17, %21 : vector<1x256xf32>
    %36 = arith.maximumf %15, %19 : vector<1x256xf32>
    %37 = arith.subf %35, %36 : vector<1x256xf32>
    %cst_13 = arith.constant 0.000000e+00 : f32
    %38 = vector.broadcast %cst_13 : f32 to vector<1x256xf32>
    %39 = arith.maximumf %37, %38 : vector<1x256xf32>
    %40 = arith.mulf %34, %39 : vector<1x256xf32>
    %41 = arith.mulf %22, %25 : vector<1x256xf32>
    %42 = arith.mulf %26, %29 : vector<1x256xf32>
    %43 = arith.addf %41, %42 : vector<1x256xf32>
    %44 = arith.subf %43, %40 : vector<1x256xf32>
    %cst_14 = arith.constant 1.000000e-07 : f32
    %45 = vector.broadcast %cst_14 : f32 to vector<1x256xf32>
    %46 = arith.addf %44, %45 : vector<1x256xf32>
    %47 = tpu.reciprocal %46 {approx = true} : vector<1x256xf32> -> vector<1x256xf32>
    %48 = arith.mulf %40, %47 : vector<1x256xf32>
    %49 = arith.maximumf %16, %20 : vector<1x256xf32>
    %50 = arith.minimumf %14, %18 : vector<1x256xf32>
    %51 = arith.subf %49, %50 : vector<1x256xf32>
    %52 = arith.maximumf %17, %21 : vector<1x256xf32>
    %53 = arith.minimumf %15, %19 : vector<1x256xf32>
    %54 = arith.subf %52, %53 : vector<1x256xf32>
    %55 = arith.mulf %51, %51 : vector<1x256xf32>
    %56 = arith.mulf %54, %54 : vector<1x256xf32>
    %57 = arith.addf %55, %56 : vector<1x256xf32>
    %cst_15 = arith.constant 1.000000e-07 : f32
    %58 = vector.broadcast %cst_15 : f32 to vector<1x256xf32>
    %59 = arith.addf %57, %58 : vector<1x256xf32>
    %60 = arith.addf %18, %20 : vector<1x256xf32>
    %61 = arith.subf %60, %14 : vector<1x256xf32>
    %62 = arith.subf %61, %16 : vector<1x256xf32>
    %63 = arith.mulf %62, %62 : vector<1x256xf32>
    %64 = arith.addf %19, %21 : vector<1x256xf32>
    %65 = arith.subf %64, %15 : vector<1x256xf32>
    %66 = arith.subf %65, %17 : vector<1x256xf32>
    %67 = arith.mulf %66, %66 : vector<1x256xf32>
    %68 = arith.addf %63, %67 : vector<1x256xf32>
    %cst_16 = arith.constant 2.500000e-01 : f32
    %69 = vector.broadcast %cst_16 : f32 to vector<1x256xf32>
    %70 = arith.mulf %68, %69 : vector<1x256xf32>
    %71 = arith.mulf %26, %25 : vector<1x256xf32>
    %72 = arith.mulf %22, %29 : vector<1x256xf32>
    %73 = arith.subf %71, %72 : vector<1x256xf32>
    %74 = arith.mulf %25, %29 : vector<1x256xf32>
    %75 = arith.mulf %22, %26 : vector<1x256xf32>
    %76 = arith.addf %74, %75 : vector<1x256xf32>
    %77 = tpu.reciprocal %76 {approx = true} : vector<1x256xf32> -> vector<1x256xf32>
    %78 = arith.mulf %73, %77 : vector<1x256xf32>
    %79 = arith.mulf %78, %78 : vector<1x256xf32>
    %cst_17 = arith.constant 1.000000e+00 : f32
    %80 = vector.broadcast %cst_17 : f32 to vector<1x256xf32>
    %81 = arith.addf %80, %79 : vector<1x256xf32>
    %82 = math.sqrt %81 : vector<1x256xf32>
    %cst_18 = arith.constant 1.000000e+00 : f32
    %83 = vector.broadcast %cst_18 : f32 to vector<1x256xf32>
    %84 = arith.addf %83, %82 : vector<1x256xf32>
    %85 = tpu.reciprocal %84 {approx = true} : vector<1x256xf32> -> vector<1x256xf32>
    %86 = arith.mulf %78, %85 : vector<1x256xf32>
    %87 = arith.mulf %86, %86 : vector<1x256xf32>
    %cst_19 = arith.constant 1.000000e+00 : f32
    %88 = vector.broadcast %cst_19 : f32 to vector<1x256xf32>
    %89 = arith.addf %88, %87 : vector<1x256xf32>
    %90 = math.sqrt %89 : vector<1x256xf32>
    %cst_20 = arith.constant 1.000000e+00 : f32
    %91 = vector.broadcast %cst_20 : f32 to vector<1x256xf32>
    %92 = arith.addf %91, %90 : vector<1x256xf32>
    %93 = tpu.reciprocal %92 {approx = true} : vector<1x256xf32> -> vector<1x256xf32>
    %94 = arith.mulf %86, %93 : vector<1x256xf32>
    %95 = arith.mulf %94, %94 : vector<1x256xf32>
    %cst_21 = arith.constant 1.000000e+00 : f32
    %96 = vector.broadcast %cst_21 : f32 to vector<1x256xf32>
    %97 = arith.addf %96, %95 : vector<1x256xf32>
    %98 = math.sqrt %97 : vector<1x256xf32>
    %cst_22 = arith.constant 1.000000e+00 : f32
    %99 = vector.broadcast %cst_22 : f32 to vector<1x256xf32>
    %100 = arith.addf %99, %98 : vector<1x256xf32>
    %101 = tpu.reciprocal %100 {approx = true} : vector<1x256xf32> -> vector<1x256xf32>
    %102 = arith.mulf %94, %101 : vector<1x256xf32>
    %103 = arith.mulf %102, %102 : vector<1x256xf32>
    %cst_23 = arith.constant 0.111111112 : f32
    %104 = vector.broadcast %cst_23 : f32 to vector<1x256xf32>
    %105 = arith.mulf %103, %104 : vector<1x256xf32>
    %cst_24 = arith.constant -0.142857149 : f32
    %106 = vector.broadcast %cst_24 : f32 to vector<1x256xf32>
    %107 = arith.addf %106, %105 : vector<1x256xf32>
    %108 = arith.mulf %103, %107 : vector<1x256xf32>
    %cst_25 = arith.constant 2.000000e-01 : f32
    %109 = vector.broadcast %cst_25 : f32 to vector<1x256xf32>
    %110 = arith.addf %109, %108 : vector<1x256xf32>
    %111 = arith.mulf %103, %110 : vector<1x256xf32>
    %cst_26 = arith.constant -0.333333343 : f32
    %112 = vector.broadcast %cst_26 : f32 to vector<1x256xf32>
    %113 = arith.addf %112, %111 : vector<1x256xf32>
    %114 = arith.mulf %103, %113 : vector<1x256xf32>
    %cst_27 = arith.constant 1.000000e+00 : f32
    %115 = vector.broadcast %cst_27 : f32 to vector<1x256xf32>
    %116 = arith.addf %115, %114 : vector<1x256xf32>
    %117 = arith.mulf %102, %116 : vector<1x256xf32>
    %cst_28 = arith.constant 8.000000e+00 : f32
    %118 = vector.broadcast %cst_28 : f32 to vector<1x256xf32>
    %119 = arith.mulf %118, %117 : vector<1x256xf32>
    %cst_29 = arith.constant 0.405284733 : f32
    %120 = vector.broadcast %cst_29 : f32 to vector<1x256xf32>
    %121 = arith.mulf %120, %119 : vector<1x256xf32>
    %122 = arith.mulf %121, %119 : vector<1x256xf32>
    %123 = arith.subf %122, %48 : vector<1x256xf32>
    %cst_30 = arith.constant 1.00000012 : f32
    %124 = vector.broadcast %cst_30 : f32 to vector<1x256xf32>
    %125 = arith.addf %123, %124 : vector<1x256xf32>
    %126 = tpu.reciprocal %125 {approx = true} : vector<1x256xf32> -> vector<1x256xf32>
    %127 = arith.mulf %122, %126 : vector<1x256xf32>
    %128 = tpu.reciprocal %59 {approx = true} : vector<1x256xf32> -> vector<1x256xf32>
    %129 = arith.mulf %70, %128 : vector<1x256xf32>
    %130 = arith.mulf %122, %127 : vector<1x256xf32>
    %131 = arith.addf %129, %130 : vector<1x256xf32>
    %132 = arith.subf %48, %131 : vector<1x256xf32>
    %cst_31 = arith.constant 1.000000e+00 : f32
    %133 = vector.broadcast %cst_31 : f32 to vector<1x256xf32>
    %134 = arith.subf %133, %132 : vector<1x256xf32>
    %135 = arith.mulf %134, %4 : vector<1x256xf32>
    %cst_32 = arith.constant 0.000000e+00 : f32
    %136 = vector.broadcast %cst_32 : f32 to vector<1x256xf32>
    %137 = arith.select %13, %135, %136 : vector<1x256xi1>, vector<1x256xf32>
    %c0_33 = arith.constant 0 : index
    %c0_34 = arith.constant 0 : index
    %138 = vector.load %arg6[%c0_33, %c0_34] : memref<1x256xf32, #tpu.memory_space<vmem>>, vector<1x256xf32>
    tpu.vector_store %arg6[%c0_33, %c0_34], %137 {strides = array<i32>} : memref<1x256xf32, #tpu.memory_space<vmem>>, vector<1x256xf32>,
    %139 = vector.extract_strided_slice %3 {offsets = [0, 0], sizes = [1, 256], strides = [1, 1]} : vector<2x256xf32> to vector<1x256xf32>
    %140 = vector.extract_strided_slice %3 {offsets = [1, 0], sizes = [1, 256], strides = [1, 1]} : vector<2x256xf32> to vector<1x256xf32>
    %141 = arith.subf %139, %18 : vector<1x256xf32>
    %142 = arith.subf %140, %19 : vector<1x256xf32>
    %143 = arith.subf %20, %139 : vector<1x256xf32>
    %144 = arith.subf %21, %140 : vector<1x256xf32>
    %145 = tpu.concatenate %141, %142, %143, %144 in 0 : vector<1x256xf32>, vector<1x256xf32>, vector<1x256xf32>, vector<1x256xf32> -> vector<4x256xf32>
    %cst_35 = arith.constant 0.000000e+00 : f32
    %cst_36 = arith.constant 1.499000e+01 : f32
    %146 = vector.broadcast %cst_35 : f32 to vector<4x256xf32>
    %147 = arith.maximumf %146, %145 : vector<4x256xf32>
    %148 = vector.broadcast %cst_36 : f32 to vector<4x256xf32>
    %149 = arith.minimumf %148, %147 : vector<4x256xf32>
    %150 = math.floor %149 : vector<4x256xf32>
    %cst_37 = arith.constant 1.000000e+00 : f32
    %151 = vector.broadcast %cst_37 : f32 to vector<4x256xf32>
    %152 = arith.addf %150, %151 : vector<4x256xf32>
    %153 = arith.subf %152, %149 : vector<4x256xf32>
    %cst_38 = arith.constant 1.000000e+00 : f32
    %154 = vector.broadcast %cst_38 : f32 to vector<4x256xf32>
    %155 = arith.subf %154, %153 : vector<4x256xf32>
    %156 = arith.fptosi %150 : vector<4x256xf32> to vector<4x256xi32>
    %157 = vector.shape_cast %156 : vector<4x256xi32> to vector<4x1x256xi32>
    %158 = vector.shape_cast %0 : vector<64x256xf32> to vector<4x16x256xf32>
    %cst_39 = arith.constant dense<0xFF800000> : vector<4x256xf32>
    %159 = vector.multi_reduction <maximumf>, %158, %cst_39 [1] : vector<4x16x256xf32> to vector<4x256xf32>
    %160 = vector.shape_cast %159 : vector<4x256xf32> to vector<4x1x256xf32>
    %161 = vector.broadcast %160 : vector<4x1x256xf32> to vector<4x16x256xf32>
    %162 = arith.subf %158, %161 : vector<4x16x256xf32>
    %163 = math.exp %162 : vector<4x16x256xf32>
    %cst_40 = arith.constant dense<0.000000e+00> : vector<4x256xf32>
    %164 = vector.multi_reduction <add>, %163, %cst_40 [1] : vector<4x16x256xf32> to vector<4x256xf32>
    %165 = math.log %164 : vector<4x256xf32>
    %166 = arith.addf %159, %165 : vector<4x256xf32>
    %167 = tpu.iota {dimensions = array<i32: 1>} : vector<4x16x256xi32>
    %168 = vector.broadcast %157 : vector<4x1x256xi32> to vector<4x16x256xi32>
    %169 = arith.cmpi eq, %167, %168 : vector<4x16x256xi32>
    %cst_41 = arith.constant 0.000000e+00 : f32
    %170 = vector.broadcast %cst_41 : f32 to vector<4x16x256xf32>
    %171 = arith.select %169, %158, %170 : vector<4x16x256xi1>, vector<4x16x256xf32>
    %cst_42 = arith.constant dense<0.000000e+00> : vector<4x256xf32>
    %172 = vector.multi_reduction <add>, %171, %cst_42 [1] : vector<4x16x256xf32> to vector<4x256xf32>
    %c1_i32 = arith.constant 1 : i32
    %173 = vector.broadcast %c1_i32 : i32 to vector<4x1x256xi32>
    %174 = arith.addi %157, %173 : vector<4x1x256xi32>
    %175 = vector.broadcast %174 : vector<4x1x256xi32> to vector<4x16x256xi32>
    %176 = arith.cmpi eq, %167, %175 : vector<4x16x256xi32>
    %cst_43 = arith.constant 0.000000e+00 : f32
    %177 = vector.broadcast %cst_43 : f32 to vector<4x16x256xf32>
    %178 = arith.select %176, %158, %177 : vector<4x16x256xi1>, vector<4x16x256xf32>
    %cst_44 = arith.constant dense<0.000000e+00> : vector<4x256xf32>
    %179 = vector.multi_reduction <add>, %178, %cst_44 [1] : vector<4x16x256xf32> to vector<4x256xf32>
    %180 = arith.subf %166, %172 : vector<4x256xf32>
    %181 = arith.mulf %180, %153 : vector<4x256xf32>
    %182 = arith.subf %166, %179 : vector<4x256xf32>
    %183 = arith.mulf %182, %155 : vector<4x256xf32>
    %184 = arith.addf %181, %183 : vector<4x256xf32>
    %cst_45 = arith.constant dense<0.000000e+00> : vector<256xf32>
    %185 = vector.multi_reduction <add>, %184, %cst_45 [0] : vector<4x256xf32> to vector<256xf32>
    %186 = vector.shape_cast %185 : vector<256xf32> to vector<1x256xf32>
    %cst_46 = arith.constant 2.500000e-01 : f32
    %187 = vector.broadcast %cst_46 : f32 to vector<1x256xf32>
    %188 = arith.mulf %186, %187 : vector<1x256xf32>
    %189 = arith.mulf %188, %4 : vector<1x256xf32>
    %cst_47 = arith.constant 0.000000e+00 : f32
    %190 = vector.broadcast %cst_47 : f32 to vector<1x256xf32>
    %191 = arith.select %13, %189, %190 : vector<1x256xi1>, vector<1x256xf32>
    %c0_48 = arith.constant 0 : index
    %c0_49 = arith.constant 0 : index
    %192 = vector.load %arg7[%c0_48, %c0_49] : memref<1x256xf32, #tpu.memory_space<vmem>>, vector<1x256xf32>
    tpu.vector_store %arg7[%c0_48, %c0_49], %191 {strides = array<i32>} : memref<1x256xf32, #tpu.memory_space<vmem>>, vector<1x256xf32>,
    return
  }
  func.func @transform_0(%arg0: i32) -> (i32, i32) {
    %c0_i32 = arith.constant 0 : i32
    %c0_i32_0 = arith.constant 0 : i32
    return %c0_i32, %arg0 : i32, i32
  }
  func.func @transform_1(%arg0: i32) -> (i32, i32) {
    %c0_i32 = arith.constant 0 : i32
    %c0_i32_0 = arith.constant 0 : i32
    return %c0_i32, %arg0 : i32, i32
  }
  func.func @transform_2(%arg0: i32) -> (i32, i32) {
    %c0_i32 = arith.constant 0 : i32
    %c0_i32_0 = arith.constant 0 : i32
    return %c0_i32, %arg0 : i32, i32
  }
  func.func @transform_3(%arg0: i32) -> (i32, i32) {
    %c0_i32 = arith.constant 0 : i32
    %c0_i32_0 = arith.constant 0 : i32
    return %c0_i32, %arg0 : i32, i32
  }
  func.func @transform_4(%arg0: i32) -> (i32, i32) {
    %c0_i32 = arith.constant 0 : i32
    %c0_i32_0 = arith.constant 0 : i32
    return %c0_i32, %arg0 : i32, i32
  }
  func.func @transform_5(%arg0: i32) -> (i32, i32) {
    %c0_i32 = arith.constant 0 : i32
    %c0_i32_0 = arith.constant 0 : i32
    return %c0_i32, %arg0 : i32, i32
  }
  func.func @transform_6(%arg0: i32) -> (i32, i32) {
    %c0_i32 = arith.constant 0 : i32
    %c0_i32_0 = arith.constant 0 : i32
    return %c0_i32, %arg0 : i32, i32
  }
}

</mosaic_0001>

<bundles_post_ra>
// kernel: bbox_loss.1
= control target key start
LH: loop header
LB: loop body
LE: loop exit
PB: predicated region body
PF: predicated region fallthrough
CT: control target
= control target key end

     0   :  { %v1783_v2 = vlaneseq  ;;  %v1047_v45 = vmov 1983009808   ;;  %vm329_vm0 = vcmask 1040384   ;;  %vm332_vm1 = vcmask 1041408   ;;  %s1775_s0 = inlined_call_operand.vmem [shape: f32[64,256], index: 0, kind: input, shape index: {}]   ;;  %s1776_s1 = inlined_call_operand.vmem [shape: f32[4,256], index: 1, kind: input, shape index: {}]   ;;  %s1777_s3 = inlined_call_operand.vmem [shape: f32[4,256], index: 3, kind: input, shape index: {}]   ;;  %s1778_s2 = inlined_call_operand.vmem [shape: f32[2,256], index: 2, kind: input, shape index: {}]   ;;  %s1779_s4 = inlined_call_operand.vmem [shape: f32[1,256], index: 4, kind: input, shape index: {}]   ;;  %s1780_s6 = inlined_call_operand.vmem [shape: f32[1,256], index: 6, kind: output, shape index: {1}]   ;;  %s1781_s5 = inlined_call_operand.vmem [shape: f32[1,256], index: 5, kind: output, shape index: {0}]  }
   0x1   :  { %v1091_v0 = vld [vmem:[%s1775_s0] sm:$0xff]  ;;  %v1096_v1 = vld [vmem:[%s1775_s0 + $0x10] sm:$0xff]  ;;  %v1101_v3 = vld [vmem:[%s1775_s0 + $0x8] sm:$0xff]  ;;  %v259_v46 = vunpack.c.l.s4 %v1047_v45  ;;  %vm335_vm2 = vcmask 1042432  }
   0x2   :  { %1802 = vst [vmem:[#allocation2_spill] sm:$0xff] %v1091_v0  ;;  %1803 = vst [vmem:[#allocation3_spill] sm:$0xff] %v1096_v1  ;;  %v1106_v4 = vld [vmem:[%s1775_s0 + $0x18] sm:$0xff]  ;;  %v38_v5 = vld [vmem:[%s1776_s1] sm:$0xff]  ;;  %v377_v7 = vmax.f32 %v1091_v0, %v1096_v1  ;;  %v1122_v12 = vshrl.u32 %v1783_v2, 7 }
   0x3   :  { %1804 = vst [vmem:[#allocation4_spill] sm:$0xff] %v1101_v3  ;;  %v1114_v6 = vld [vmem:[%s1777_s3] sm:$0xff]  ;;  %v66_v8 = vrot.slane %v38_v5, 6  ;;  %v1132_v14 = vld [vmem:[%s1775_s0 + $0x30] sm:$0xff]  ;;  %v384_v18 = vmax.f32 %v1101_v3, %v1106_v4  ;;  %v1152_v35 = vld [vmem:[%s1775_s0 + $0x28] sm:$0xff]  ;;  %v260_v63 = vunpack.c.0.s8 %v259_v46 }
   0x4   :  { %v71_v9 = vrot.slane %v1114_v6, 6  ;;  %v75_v10 = vmin.f32 %v38_v5, %v1114_v6  ;;  %v76_v11 = vmax.f32 %v38_v5, %v1114_v6  ;;  %v1127_v13 = vld [vmem:[%s1775_s0 + $0x20] sm:$0xff]  ;;  %v1140_v19 = vsub.s32 0, %v1122_v12  ;;  %v1158_v39 = vld [vmem:[%s1775_s0 + $0x38] sm:$0xff]  ;;  %v1168_v41 = vld [vmem:[%s1775_s0 + $0x50] sm:$0xff] }
   0x5   :  { %v1134_v15 = vsub.f32 %v38_v5, %v66_v8  ;;  %v1143_v20 = vsub.s32 1, %v1122_v12  ;;  %v378_v26 = vrot.slane %v377_v7, 4  ;;  %v117_v29 = vrot.slane %v66_v8, 4  ;;  %v1163_v40 = vld [vmem:[%s1775_s0 + $0x40] sm:$0xff]  ;;  %1805 = vst [vmem:[#allocation5_spill] sm:$0xff] %v1168_v41  ;;  %v1173_v47 = vld [vmem:[%s1775_s0 + $0x48] sm:$0xff] }
   0x6   :  { %v73_v16 = vsub.f32 %v1114_v6, %v71_v9  ;;  %v78_v17 = vrot.slane %v76_v11, 6  ;;  %v103_v21 = vrot.slane %v75_v10, 6  ;;  %v113_v22 = vrot.slane %v71_v9, 4  ;;  %v1178_v48 = vld [vmem:[%s1775_s0 + $0x58] sm:$0xff]  ;;  %v1183_v52 = vld [vmem:[%s1775_s0 + $0x60] sm:$0xff]  ;;  %v1188_v53 = vld [vmem:[%s1775_s0 + $0x70] sm:$0xff] }
   0x7   :  { %v69_v23 = vadd.f32 1e-07, %v1134_v15  ;;  %v391_v30 = vmax.f32 %v1127_v13, %v1132_v14  ;;  %v385_v34 = vrot.slane %v384_v18, 4  ;;  %1806 = vst [vmem:[#allocation6_spill] sm:$0xff] %v1178_v48  ;;  %v379_v51 = vmax.f32 %v377_v7, %v378_v26  ;;  %1807 = vst [vmem:[#allocation7_spill] sm:$0xff] %v1183_v52 }
   0x8   :  { %v74_v24 = vadd.f32 1e-07, %v73_v16  ;;  %v80_v25 = vsub.f32 %v75_v10, %v78_v17  ;;  %v105_v27 = vsub.f32 %v76_v11, %v103_v21  ;;  %v115_v28 = vadd.f32 %v113_v22, %v1114_v6 }
   0x9   :  { %v88_v32 = vrot.slane %v69_v23, 5  ;;  %v131_v38 = vmul.f32 %v73_v16, %v1134_v15  ;;  %v392_v57 = vrot.slane %v391_v30, 4  ;;  %v398_v60 = vmax.f32 %v1152_v35, %v1158_v39 }
   0xa   :  { %v81_v31 = vmax.f32 %v80_v25, 0.0  ;;  %v93_v33 = vrot.slane %v74_v24, 5  ;;  %v116_v36 = vsub.f32 %v115_v28, %v38_v5  ;;  %v130_v37 = vmul.f32 %v74_v24, %v69_v23  ;;  %v40_v24 = vld [vmem:[%s1778_s2] sm:$0xf] }
   0xb   :  { %v89_v43 = vrot.slane %v88_v32, 4  ;;  %v133_v50 = vrot.slane %v131_v38, 7  ;;  %v1193_v58 = vmul.f32 %v105_v27, %v105_v27  ;;  %v1199_v61 = vmax.f32 %v1163_v40, %v1168_v41 }
   0xc   :  { %v963_v42 = vrot.slane %v81_v31, 9  ;;  %v94_v44 = vrot.slane %v93_v33, 4  ;;  %v119_v49 = vsub.f32 %v116_v36, %v117_v29  ;;  %v1048_v5 = vmov 572653568  }
   0xd   :  { %v91_v55 = vmul.f32 %v89_v43, %v1134_v15  ;;  %v135_v59 = vadd.f32 %v133_v50, %v130_v37  ;;  %v269_v7 = vunpack.c.l.s4 %v1048_v5  ;;  %v1203_v8 = vmax.f32 %v1173_v47, %v1178_v48 }
   0xe   :  { %v1190_v54 = vmul.f32 %v963_v42, %v81_v31  ;;  %v96_v56 = vmul.f32 %v94_v44, %v73_v16  ;;  %v380_v9 = vrot.slane %v379_v51, 2  ;;  %v386_v10 = vmax.f32 %v384_v18, %v385_v34 }
   0xf   :  { %979 = vrcp.f32 %v135_v59  ;;  %v1207_v11 = vmax.f32 %v1183_v52, %v1188_v53  ;;  %v263_v21 = vsub.s32 %v260_v63, %v1122_v12  ;;  %v270_v22 = vunpack.c.0.s8 %v269_v7 }
  0x10   :  { %v97_v62 = vadd.f32 %v96_v56, %v91_v55  ;;  %v393_v23 = vmax.f32 %v391_v30, %v392_v57  ;;  %v964_v25 = vrot.slane %v1193_v58, 9  ;;  %v127_v26 = vmul.f32 %v89_v43, %v73_v16 }
  0x11   :  { %v1216_v27 = vsub.s32 2, %v1122_v12  ;;  %v264_v28 = vrot.slane %v1114_v6, %v263_v21  ;;  %v273_v29 = vsub.s32 %v270_v22, %v1122_v12  ;;  %v1049_v31 = vmov 858984721  }
  0x12   :  { %v98_v17 = vsub.f32 %v97_v62, %v1190_v54  ;;  %v278_v32 = vunpack.c.l.s4 %v1049_v31  ;;  %v1220_v33 = vmul.f32 %v119_v49, %v119_v49  ;;  %v128_v30 = vmul.f32 %v94_v44, %v1134_v15 }
  0x13   :  { %1808 = vst [vmem:[#allocation8_spill] sm:$0xff] %v1216_v27  ;;  %v1782_v34 = vsub.s32 6, %v1122_v12  ;;  %v303_v36 = vsub.s32 3, %v1122_v12  ;;  %v266_v16 = vsub.f32 %v40_v24, %v264_v28  ;;  %v274_v37 = vrot.slane %v40_v24, %v273_v29 }
  0x14   :  { %v99_v18 = vadd.f32 1e-07, %v98_v17  ;;  %v279_v38 = vunpack.c.0.s8 %v278_v32  ;;  %v325_v42 = vsub.s32 7, %v1122_v12  ;;  %v381_v43 = vmax.f32 %v379_v51, %v380_v9 }
  0x15   :  { %v387_v45 = vrot.slane %v386_v10, 2  ;;  %v276_v46 = vsub.f32 %v1114_v6, %v274_v37  ;;  %v290_v50 = vrot.slane %v266_v16, %v1140_v19  ;;  %v294_v15 = vrot.slane %v266_v16, %v1216_v27 }
  0x16   :  { %981 = vrcp.f32 %v99_v18  ;;  %v282_v49 = vsub.s32 %v279_v38, %v1122_v12  ;;  %v300_v44 = vrot.slane %v266_v16, %v1143_v20  ;;  %v304_v55 = vrot.slane %v266_v16, %v303_v36 }
  0x17   :  { %v394_v56 = vrot.slane %v393_v23, 2  ;;  %v399_v57 = vrot.slane %v398_v60, 4  ;;  %v311_v62 = vrot.slane %v276_v46, %v1216_v27  ;;  %v315_v51 = vrot.slane %v276_v46, %v1782_v34 }
  0x18   :  { %v283_v59 = vrot.slane %v40_v24, %v282_v49  ;;  %v129_v63 = vsub.f32 %v127_v26, %v128_v30  ;;  %v330_v5 = vsel %vm329_vm0, %v290_v50, %v300_v44  ;;  %v331_v7 = vsel %vm329_vm0, %v294_v15, %v304_v55 }
  0x19   :  { %v388_v9 = vmax.f32 %v386_v10, %v387_v45  ;;  %v382_v21 = vrot.slane %v381_v43, 1  ;;  %v333_v22 = vsel %vm332_vm1, %v330_v5, %v311_v62  ;;  %v334_v18 = vsel %vm332_vm1, %v331_v7, %v315_v51 }
  0x1a   :  { %v285_v17 = vsub.f32 %v1114_v6, %v283_v59  ;;  %v395_v28 = vmax.f32 %v393_v23, %v394_v56  ;;  %v400_v24 = vmax.f32 %v398_v60, %v399_v57  ;;  %v406_v16 = vrot.slane %v1199_v61, 4  ;;  %v1242_v6 = vld [vmem:[%s1775_s0 + $0x68] sm:$0xff]  ;;  %v1247_v60 = vld [vmem:[%s1775_s0 + $0x78] sm:$0xff] }
  0x1b   :  { %v413_v26 = vrot.slane %v1203_v8, 4  ;;  %v1050_v37 = vmov 1966171168   ;;  %v389_v46 = vrot.slane %v388_v9, 1  ;;  %v420_v59 = vrot.slane %v1207_v11, 4 }
  0x1c   :  { %v980_v29 = vpop.eup %979  ;;  %v322_v31 = vrot.slane %v285_v17, %v303_v36  ;;  %v326_v32 = vrot.slane %v285_v17, %v325_v42  ;;  %v239_v38 = vunpack.c.l.s4 %v1050_v37  ;;  %v401_v10 = vrot.slane %v400_v24, 2 }
  0x1d   :  { %v966_v30 = vrot.slane %v980_v29, 9  ;;  %v407_v42 = vmax.f32 %v1199_v61, %v406_v16  ;;  %v414_v45 = vmax.f32 %v1203_v8, %v413_v26  ;;  %v396_v44 = vrot.slane %v395_v28, 1 }
  0x1e   :  { %v336_v23 = vsel %vm335_vm2, %v333_v22, %v322_v31  ;;  %v337_v36 = vsel %vm335_vm2, %v334_v18, %v326_v32  ;;  %v402_v55 = vmax.f32 %v400_v24, %v401_v10  ;;  %v426_v61 = vmax.f32 %v1242_v6, %v1247_v60 }
  0x1f   :  { %v1253_v49 = vmul.f32 %v966_v30, %v129_v63  ;;  %v338_v50 = vmax.f32 %v336_v23, 0.0  ;;  %v339_v15 = vmax.f32 %v337_v36, 0.0  ;;  %v408_v56 = vrot.slane %v407_v42, 2 }
  0x20   :  { %v415_v57 = vrot.slane %v414_v45, 2  ;;  %v403_v63 = vrot.slane %v402_v55, 1  ;;  %v421_v31 = vmax.f32 %v1207_v11, %v420_v59  ;;  %v1272_v32 = vmax.f32 %v381_v43, %v382_v21 }
  0x21   :  { %v142_v51 = vmul.f32 %v1253_v49, %v1253_v49  ;;  %v1258_v5 = vmin.f32 %v338_v50, 14.99  ;;  %v1260_v7 = vmin.f32 %v339_v15, 14.99  ;;  %v409_v17 = vmax.f32 %v407_v42, %v408_v56 }
  0x22   :  { %v416_v22 = vmax.f32 %v414_v45, %v415_v57  ;;  %v1274_v16 = vmax.f32 %v388_v9, %v389_v46  ;;  %v427_v26 = vrot.slane %v426_v61, 4  ;;  %v965_v30 = vrot.slane %v1220_v33, 9 }
  0x23   :  { %v982_v62 = vpop.eup %981  ;;  %v1267_v18 = vadd.f32 1.0, %v142_v51  ;;  %v342_v24 = vfloor.f32 %v1258_v5  ;;  %v343_v29 = vfloor.f32 %v1260_v7  ;;  %v240_v37 = vunpack.c.0.s8 %v239_v38 }
  0x24   :  { %v1265_v8 = vmul.f32 %v982_v62, %v1190_v54  ;;  %v111_v54 = vadd.f32 %v964_v25, %v1193_v58  ;;  %v1285_v43 = vmax.f32 %v395_v28, %v396_v44  ;;  %v410_v9 = vrot.slane %v409_v17, 1 }
  0x25   :  { %983 = vrsqrt.f32 %v1267_v18  ;;  %v969_v10 = vtrunc.f32 %v342_v24  ;;  %v971_v11 = vtrunc.f32 %v343_v29  ;;  %v1287_v21 = vmax.f32 %v402_v55, %v403_v63 }
  0x26   :  { %1809 = vst [vmem:[#allocation9_spill] sm:$0xff] %v1265_v8  ;;  %v417_v46 = vrot.slane %v416_v22, 1  ;;  %v422_v23 = vrot.slane %v421_v31, 2  ;;  %v428_v36 = vmax.f32 %v426_v61, %v427_v26  ;;  %v433_v42 = vsub.f32 %v1091_v0, %v1272_v32 }
  0x27   :  { %v970_v58 = vcvt.f32.s32 %v969_v10  ;;  %v972_v25 = vcvt.f32.s32 %v971_v11  ;;  %v434_v38 = vsub.f32 %v1101_v3, %v1274_v16  ;;  %v435_v28 = vsub.f32 %v1096_v1, %v1272_v32 }
  0x28   :  { %v423_v45 = vmax.f32 %v421_v31, %v422_v23  ;;  %v429_v50 = vrot.slane %v428_v36, 2  ;;  %v436_v15 = vsub.f32 %v1106_v4, %v1274_v16  ;;  %v1297_v44 = vadd.f32 1e-07, %v111_v54 }
  0x29   :  { %v1300_v55 = vadd.f32 %v965_v30, %v1220_v33  ;;  %v1302_v56 = vmax.f32 %v409_v17, %v410_v9  ;;  %v437_v57 = vsub.f32 %v1127_v13, %v1285_v43  ;;  %v1307_v59 = vsub.s32 %v240_v37, %v1122_v12 }
  0x2a   :  { %v1309_v62 = vmax.f32 %v416_v22, %v417_v46  ;;  %v430_v51 = vmax.f32 %v428_v36, %v429_v50  ;;  %v438_v61 = vsub.f32 %v1152_v35, %v1287_v21  ;;  %v352_v63 = vcombine.low %v970_v58, %v972_v25 }
  0x2b   :  { %1810 = vst [vmem:[#allocation10_spill] sm:$0xff] %v1307_v59  ;;  %v424_v31 = vrot.slane %v423_v45, 1  ;;  %v449_v26 = vmul.f32 1.442695, %v433_v42  ;;  %v451_v54 = vmul.f32 1.442695, %v434_v38  ;;  %v439_v17 = vsub.f32 %v1132_v14, %v1285_v43 }
  0x2c   :  { %v431_v33 = vrot.slane %v430_v51, 1  ;;  %v453_v30 = vmul.f32 1.442695, %v435_v28  ;;  %v455_v10 = vmul.f32 1.442695, %v436_v15  ;;  %v440_v37 = vsub.f32 %v1158_v39, %v1287_v21 }
  0x2d   :  { %v441_v22 = vsub.f32 %v1163_v40, %v1302_v56  ;;  %985 = vpow2.f32 %v449_v26  ;;  %v457_v11 = vmul.f32 1.442695, %v437_v57  ;;  %vm146_vm3 = vcmp.eq.f32.partialorder %v1267_v18, inf }
  0x2e   :  { %v442_v9 = vsub.f32 %v1173_v47, %v1309_v62  ;;  %v443_v46 = vsub.f32 %v1168_v41, %v1302_v56  ;;  %987 = vpow2.f32 %v451_v54  ;;  %v359_v23 = vrot.slane %v352_v63, %v1307_v59 }
  0x2f   :  { %v1325_v36 = vmax.f32 %v423_v45, %v424_v31  ;;  %989 = vpow2.f32 %v453_v30  ;;  %v459_v58 = vmul.f32 1.442695, %v438_v61  ;;  %vm148_vm4 = vcmp.eq.f32.partialorder %v1267_v18, 0.0 }
  0x30   :  { %v1328_v25 = vmax.f32 %v430_v51, %v431_v33  ;;  %991 = vpow2.f32 %v455_v10  ;;  %v461_v42 = vmul.f32 1.442695, %v439_v17  ;;  %v149_v50 = vand.u32 2147483648, %v1267_v18 }
  0x31   :  { %993 = vpow2.f32 %v457_v11  ;;  %v463_v28 = vmul.f32 1.442695, %v440_v37  ;;  %v465_v15 = vmul.f32 1.442695, %v441_v22  ;;  %v444_v45 = vsub.f32 %v1178_v48, %v1309_v62 }
  0x32   :  { %1811 = vst [vmem:[#allocation11_spill] sm:$0xff] %v1328_v25  ;;  %v984_v38 = vpop.eup %983  ;;  %995 = vpow2.f32 %v459_v58  ;;  %v467_v63 = vmul.f32 1.442695, %v442_v9  ;;  %v360_v61 = vcombine.high %v359_v23, %v359_v23  ;;  %v445_v51 = vsub.f32 %v1183_v52, %v1325_v36 }
  0x33   :  { %v145_v57 = vmul.f32 %v984_v38, %v1267_v18  ;;  %997 = vpow2.f32 %v461_v42  ;;  %v469_v31 = vmul.f32 1.442695, %v443_v46  ;;  %v344_v54 = vadd.f32 1.0, %v342_v24 }
  0x34   :  { %v446_v33 = vsub.f32 %v1242_v6, %v1328_v25  ;;  %999 = vpow2.f32 %v463_v28  ;;  %v345_v30 = vadd.f32 1.0, %v343_v29  ;;  %v447_v10 = vsub.f32 %v1188_v53, %v1325_v36 }
  0x35   :  { %v147_v26 = vsel %vm146_vm3, %v1267_v18, %v145_v57  ;;  %1001 = vpow2.f32 %v465_v15  ;;  %v448_v22 = vsub.f32 %v1247_v60, %v1328_v25  ;;  %v471_v24 = vmul.f32 1.442695, %v444_v45 }
  0x36   :  { %v150_v17 = vsel %vm148_vm4, %v149_v50, %v147_v26  ;;  %1003 = vpow2.f32 %v467_v63  ;;  %v1352_v11 = vrot.slane %v359_v23, %v1307_v59  ;;  %v1355_v9 = vrot.slane %v360_v61, %v1307_v59 }
  0x37   :  { %v151_v37 = vadd.f32 1.0, %v150_v17  ;;  %1005 = vpow2.f32 %v469_v31  ;;  %v473_v18 = vmul.f32 1.442695, %v445_v51  ;;  %v1358_v29 = vsub.f32 %v344_v54, %v1258_v5 }
  0x38   :  { %v475_v46 = vmul.f32 1.442695, %v446_v33  ;;  %v1362_v58 = vsub.f32 %v345_v30, %v1260_v7  ;;  %v477_v42 = vmul.f32 1.442695, %v447_v10  ;;  %v1365_v23 = vmul.f32 0.25, %v1300_v55 }
  0x39   :  { %1007 = vrcp.f32 %v151_v37  ;;  %1812 = vst [vmem:[#allocation12_spill] sm:$0xff] %v1358_v29  ;;  %v479_v50 = vmul.f32 1.442695, %v448_v22  ;;  %v1369_v15 = vcombine.high %v1352_v11, %v1352_v11  ;;  %v1373_v5 = vcombine.high %v1355_v9, %v1355_v9 }
  0x3a   :  { %1009 = vrcp.f32 %v1297_v44  ;;  %1813 = vst [vmem:[#allocation13_spill] sm:$0xff] %v1362_v58  ;;  %v986_v38 = vpop.eup %985  ;;  %v1376_v7 = vadd.s32 8, %v1122_v12  ;;  %v1379_v57 = vsub.f32 1.0, %v1358_v29  ;;  %v567_v55 = vrot.slane %v1352_v11, %v1140_v19 }
  0x3b   :  { %1011 = vpow2.f32 %v471_v24  ;;  %v988_v28 = vpop.eup %987  ;;  %v1385_v45 = vrot.slane %v1352_v11, %v1143_v20  ;;  %v1388_v61 = vsub.f32 1.0, %v1362_v58  ;;  %v1392_v31 = vrot.slane %v1355_v9, %v1140_v19 }
  0x3c   :  { %1013 = vpow2.f32 %v473_v18  ;;  %v990_v44 = vpop.eup %989  ;;  %1814 = vst [vmem:[#allocation14_spill] sm:$0xff] %v1379_v57  ;;  %v1396_v33 = vrot.slane %v1355_v9, %v1143_v20  ;;  %v1400_v17 = vrot.slane %v1369_v15, %v1140_v19  ;;  %v1404_v37 = vrot.slane %v1369_v15, %v1143_v20 }
  0x3d   :  { %1015 = vpow2.f32 %v475_v46  ;;  %v992_v63 = vpop.eup %991  ;;  %1815 = vst [vmem:[#allocation15_spill] sm:$0xff] %v1388_v61  ;;  %v481_v51 = vadd.f32 %v990_v44, %v986_v38  ;;  %v1408_v22 = vrot.slane %v1373_v5, %v1140_v19  ;;  %v1412_v24 = vrot.slane %v1373_v5, %v1143_v20 }
  0x3e   :  { %1017 = vpow2.f32 %v477_v42  ;;  %v994_v26 = vpop.eup %993  ;;  %v488_v54 = vadd.f32 %v992_v63, %v988_v28  ;;  %vm596_vm5 = vcmp.eq.s32.totalorder %v1122_v12, %v567_v55  ;;  %vm597_vm6 = vcmp.eq.s32.totalorder %v1122_v12, %v1385_v45 }
  0x3f   :  { %1019 = vpow2.f32 %v479_v50  ;;  %v996_v30 = vpop.eup %995  ;;  %v482_v10 = vrot.slane %v481_v51, 4  ;;  %vm598_vm7 = vcmp.eq.s32.totalorder %v1376_v7, %v567_v55  ;;  %vm599_vm8 = vcmp.eq.s32.totalorder %v1376_v7, %v1385_v45 }
  0x40   :  { %v998_v18 = vpop.eup %997  ;;  %v489_v46 = vrot.slane %v488_v54, 4  ;;  %vm600_vm9 = vcmp.eq.s32.totalorder %v1122_v12, %v1392_v31  ;;  %vm601_vm10 = vcmp.eq.s32.totalorder %v1122_v12, %v1396_v33  ;;  %vm602_vm11 = vcmp.eq.s32.totalorder %v1376_v7, %v1392_v31 }
  0x41   :  { %v1000_v42 = vpop.eup %999  ;;  %v483_v38 = vadd.f32 %v482_v10, %v481_v51  ;;  %v495_v50 = vadd.f32 %v998_v18, %v994_v26  ;;  %vm603_vm12 = vcmp.eq.s32.totalorder %v1376_v7, %v1396_v33  ;;  %vm604_vm13 = vcmp.eq.s32.totalorder %v1122_v12, %v1400_v17 }
  0x42   :  { %v1002_v28 = vpop.eup %1001  ;;  %v490_v44 = vadd.f32 %v489_v46, %v488_v54  ;;  %v502_v63 = vadd.f32 %v1000_v42, %v996_v30  ;;  %vm605_vm14 = vcmp.eq.s32.totalorder %v1122_v12, %v1404_v37  ;;  %v1435_v54 = vsel %vm596_vm5, %v1091_v0, 0.0 }
  0x43   :  { %v1004_v34 = vpop.eup %1003  ;;  %v484_v2 = vrot.slane %v483_v38, 2  ;;  %v496_v27 = vrot.slane %v495_v50, 4  ;;  %v1441_v8 = vsel %vm597_vm6, %v1101_v3, 0.0  ;;  %vm606_vm15 = vcmp.eq.s32.totalorder %v1376_v7, %v1400_v17 }
  0x44   :  { %v1006_v51 = vpop.eup %1005  ;;  %v491_v26 = vrot.slane %v490_v44, 2  ;;  %v503_v10 = vrot.slane %v502_v63, 4  ;;  %vm607_vm0 = vcmp.eq.s32.totalorder %v1376_v7, %v1404_v37  ;;  %vm608_vm1 = vcmp.eq.s32.totalorder %v1122_v12, %v1408_v22 }
  0x45   :  { %v485_v18 = vadd.f32 %v484_v2, %v483_v38  ;;  %v497_v46 = vadd.f32 %v496_v27, %v495_v50  ;;  %v509_v42 = vadd.f32 %v1006_v51, %v1002_v28  ;;  %v1451_v2 = vsel %vm598_vm7, %v1096_v1, 0.0 }
  0x46   :  { %v1008_v30 = vpop.eup %1007  ;;  %v492_v57 = vadd.f32 %v491_v26, %v490_v44  ;;  %v504_v58 = vadd.f32 %v503_v10, %v502_v63  ;;  %v615_v10 = vsel %vm599_vm8, %v1106_v4, 0.0  ;;  %v617_v45 = vsel %vm601_vm10, %v1152_v35, 0.0 }
  0x47   :  { %v1010_v59 = vpop.eup %1009  ;;  %v1444_v61 = vmul.f32 %v1008_v30, %v1253_v49  ;;  %v486_v50 = vrot.slane %v485_v18, 1  ;;  %v498_v28 = vrot.slane %v497_v46, 2  ;;  %v510_v51 = vrot.slane %v509_v42, 4 }
  0x48   :  { %v1012_v27 = vpop.eup %1011  ;;  %v967_v38 = vrot.slane %v1010_v59, 10  ;;  %v493_v30 = vrot.slane %v492_v57, 1  ;;  %v505_v44 = vrot.slane %v504_v58, 2  ;;  %vm609_vm2 = vcmp.eq.s32.totalorder %v1122_v12, %v1412_v24 }
  0x49   :  { %1816 = vst [vmem:[#allocation16_spill] sm:$0xff] %v1444_v61  ;;  %v1014_v29 = vpop.eup %1013  ;;  %v154_v49 = vmul.f32 %v1444_v61, %v1444_v61  ;;  %v516_v63 = vadd.f32 %v1012_v27, %v1004_v34  ;;  %v499_v59 = vadd.f32 %v498_v28, %v497_v46  ;;  %v616_v34 = vsel %vm600_vm9, %v1127_v13, 0.0 }
  0x4a   :  { %v1016_v55 = vpop.eup %1015  ;;  %v1460_v26 = vmul.f32 %v967_v38, %v1365_v23  ;;  %v487_v3 = vadd.f32 %v486_v50, %v485_v18  ;;  %v494_v0 = vadd.f32 %v493_v30, %v492_v57  ;;  %v506_v61 = vadd.f32 %v505_v44, %v504_v58 }
  0x4b   :  { %v1018_v27 = vpop.eup %1017  ;;  %v1470_v1 = vadd.f32 1.0, %v154_v49  ;;  %v500_v23 = vrot.slane %v499_v59, 1  ;;  %v511_v38 = vadd.f32 %v510_v51, %v509_v42  ;;  %v517_v46 = vrot.slane %v516_v63, 4 }
  0x4c   :  { %1817 = vst [vmem:[#allocation17_spill] sm:$0xff] %v1460_v26  ;;  %v1020_v25 = vpop.eup %1019  ;;  %v523_v28 = vadd.f32 %v1018_v27, %v1014_v29  ;;  %v618_v49 = vsel %vm602_vm11, %v1132_v14, 0.0  ;;  %v619_v58 = vsel %vm603_vm12, %v1158_v39, 0.0  ;;  %v507_v18 = vrot.slane %v506_v61, 1 }
  0x4d   :  { %1021 = vrsqrt.f32 %v1470_v1  ;;  %v501_v57 = vadd.f32 %v500_v23, %v499_v59  ;;  %v512_v29 = vrot.slane %v511_v38, 2  ;;  %v620_v42 = vsel %vm604_vm13, %v1163_v40, 0.0 }
  0x4e   :  { %v518_v50 = vadd.f32 %v517_v46, %v516_v63  ;;  %v524_v51 = vrot.slane %v523_v28, 4  ;;  %v530_v30 = vadd.f32 %v1020_v25, %v1016_v55  ;;  %1023 = vlog2.f32 %v487_v3 }
  0x4f   :  { %v508_v31 = vadd.f32 %v507_v18, %v506_v61  ;;  %v513_v44 = vadd.f32 %v512_v29, %v511_v38  ;;  %1025 = vlog2.f32 %v494_v0  ;;  %v1495_v33 = vsel %vm605_vm14, %v1173_v47, 0.0 }
  0x50   :  { %v519_v59 = vrot.slane %v518_v50, 2  ;;  %v525_v27 = vadd.f32 %v524_v51, %v523_v28  ;;  %v531_v23 = vrot.slane %v530_v30, 4  ;;  %1027 = vlog2.f32 %v501_v57 }
  0x51   :  { %vm158_vm3 = vcmp.eq.f32.partialorder %v1470_v1, inf  ;;  %v514_v25 = vrot.slane %v513_v44, 1  ;;  %1029 = vlog2.f32 %v508_v31  ;;  %v622_v3 = vsel %vm606_vm15, %v1168_v41, 0.0 }
  0x52   :  { %vm160_vm4 = vcmp.eq.f32.partialorder %v1470_v1, 0.0  ;;  %v520_v0 = vadd.f32 %v519_v59, %v518_v50  ;;  %v526_v61 = vrot.slane %v525_v27, 2  ;;  %v532_v63 = vadd.f32 %v531_v23, %v530_v30 }
  0x53   :  { %v161_v55 = vand.u32 2147483648, %v1470_v1  ;;  %v515_v38 = vadd.f32 %v514_v25, %v513_v44  ;;  %vm610_vm5 = vcmp.eq.s32.totalorder %v1376_v7, %v1408_v22  ;;  %v1510_v46 = vsel %vm607_vm0, %v1178_v48, 0.0 }
  0x54   :  { %v1516_v17 = vsel %vm608_vm1, %v1183_v52, 0.0  ;;  %v521_v28 = vrot.slane %v520_v0, 1  ;;  %v527_v57 = vadd.f32 %v526_v61, %v525_v27  ;;  %v533_v18 = vrot.slane %v532_v63, 2 }
  0x55   :  { %vm611_vm6 = vcmp.eq.s32.totalorder %v1376_v7, %v1412_v24  ;;  %v628_v29 = vadd.f32 %v1451_v2, %v1435_v54  ;;  %1031 = vlog2.f32 %v515_v38  ;;  %v635_v37 = vadd.f32 %v615_v10, %v1441_v8 }
  0x56   :  { %v642_v50 = vadd.f32 %v618_v49, %v616_v34  ;;  %v649_v51 = vadd.f32 %v619_v58, %v617_v45  ;;  %v522_v30 = vadd.f32 %v521_v28, %v520_v0  ;;  %v528_v31 = vrot.slane %v527_v57, 1 }
  0x57   :  { %v534_v44 = vadd.f32 %v533_v18, %v532_v63  ;;  %v629_v59 = vrot.slane %v628_v29, 4  ;;  %v636_v23 = vrot.slane %v635_v37, 4  ;;  %v656_v27 = vadd.f32 %v622_v3, %v620_v42 }
  0x58   :  { %v643_v25 = vrot.slane %v642_v50, 4  ;;  %v650_v26 = vrot.slane %v649_v51, 4  ;;  %v529_v61 = vadd.f32 %v528_v31, %v527_v57  ;;  %1033 = vlog2.f32 %v522_v30 }
  0x59   :  { %v535_v52 = vrot.slane %v534_v44, 1  ;;  %v630_v48 = vadd.f32 %v629_v59, %v628_v29  ;;  %v625_v8 = vsel %vm609_vm2, %v1242_v6, 0.0  ;;  %v637_v54 = vadd.f32 %v636_v23, %v635_v37 }
  0x5a   :  { %v1022_v41 = vpop.eup %1021  ;;  %v644_v2 = vadd.f32 %v643_v25, %v642_v50  ;;  %v651_v10 = vadd.f32 %v650_v26, %v649_v51  ;;  %1035 = vlog2.f32 %v529_v61  ;;  %v657_v63 = vrot.slane %v656_v27, 4 }
  0x5b   :  { %v157_v34 = vmul.f32 %v1022_v41, %v1470_v1  ;;  %v536_v45 = vadd.f32 %v535_v52, %v534_v44  ;;  %v631_v49 = vrot.slane %v630_v48, 2  ;;  %v1024_v58 = vpop.eup %1023  ;;  %v638_v42 = vrot.slane %v637_v54, 2 }
  0x5c   :  { %v645_v3 = vrot.slane %v644_v2, 2  ;;  %v652_v0 = vrot.slane %v651_v10, 2  ;;  %v1026_v38 = vpop.eup %1025  ;;  %v538_v57 = vmul.f32 0.6931472, %v1024_v58  ;;  %v626_v31 = vsel %vm610_vm5, %v1188_v53, 0.0 }
  0x5d   :  { %v159_v28 = vsel %vm158_vm3, %v1470_v1, %v157_v34  ;;  %1037 = vlog2.f32 %v536_v45  ;;  %v632_v18 = vadd.f32 %v631_v49, %v630_v48  ;;  %v1028_v29 = vpop.eup %1027  ;;  %v540_v52 = vmul.f32 0.6931472, %v1026_v38 }
  0x5e   :  { %v162_v41 = vsel %vm160_vm4, %v161_v55, %v159_v28  ;;  %v639_v26 = vadd.f32 %v638_v42, %v637_v54  ;;  %v646_v37 = vadd.f32 %v645_v3, %v644_v2  ;;  %v1030_v50 = vpop.eup %1029  ;;  %v542_v30 = vmul.f32 0.6931472, %v1028_v29 }
  0x5f   :  { %v163_v51 = vadd.f32 1.0, %v162_v41  ;;  %v633_v44 = vrot.slane %v632_v18, 1  ;;  %v544_v59 = vmul.f32 0.6931472, %v1030_v50  ;;  %v1538_v23 = vadd.f32 %v538_v57, %v1272_v32 }
  0x60   :  { %v627_v1 = vsel %vm611_vm6, %v1247_v60, 0.0  ;;  %v640_v48 = vrot.slane %v639_v26, 1  ;;  %v1545_v55 = vadd.f32 %v540_v52, %v1274_v16  ;;  %v647_v25 = vrot.slane %v646_v37, 1 }
  0x61   :  { %1039 = vrcp.f32 %v163_v51  ;;  %v653_v61 = vadd.f32 %v652_v0, %v651_v10  ;;  %v1548_v22 = vadd.f32 %v542_v30, %v1285_v43  ;;  %v1551_v54 = vadd.f32 %v544_v59, %v1287_v21 }
  0x62   :  { %v1553_v32 = vadd.f32 %v633_v44, %v632_v18  ;;  %v658_v2 = vadd.f32 %v657_v63, %v656_v27  ;;  %v1032_v34 = vpop.eup %1031  ;;  %v663_v24 = vadd.f32 %v1510_v46, %v1495_v33  ;;  %v670_v49 = vadd.f32 %v626_v31, %v1516_v17 }
  0x63   :  { %v654_v45 = vrot.slane %v653_v61, 1  ;;  %v677_v16 = vadd.f32 %v627_v1, %v625_v8  ;;  %v546_v58 = vmul.f32 0.6931472, %v1032_v34  ;;  %v1558_v42 = vadd.f32 %v640_v48, %v639_v26 }
  0x64   :  { %v659_v10 = vrot.slane %v658_v2, 2  ;;  %v684_v43 = vadd.s32 1, %v1352_v11  ;;  %v1561_v3 = vadd.f32 %v647_v25, %v646_v37  ;;  %v664_v21 = vrot.slane %v663_v24, 4 }
  0x65   :  { %v671_v0 = vrot.slane %v670_v49, 4  ;;  %v678_v38 = vrot.slane %v677_v16, 4  ;;  %v1034_v27 = vpop.eup %1033  ;;  %v1564_v63 = vadd.f32 %v546_v58, %v1302_v56  ;;  %v1566_v28 = vadd.f32 %v654_v45, %v653_v61  ;;  %v1818_v58 = vld [vmem:[#allocation11_spill] sm:$0xff] }
  0x66   :  { %v660_v33 = vadd.f32 %v659_v10, %v658_v2  ;;  %v685_v46 = vadd.s32 1, %v1355_v9  ;;  %v548_v17 = vmul.f32 0.6931472, %v1034_v27  ;;  %v665_v8 = vadd.f32 %v664_v21, %v663_v24 }
  0x67   :  { %v672_v57 = vadd.f32 %v671_v0, %v670_v49  ;;  %v679_v18 = vadd.f32 %v678_v38, %v677_v16  ;;  %v1036_v29 = vpop.eup %1035  ;;  %v686_v41 = vadd.s32 1, %v1369_v15  ;;  %v687_v52 = vadd.s32 1, %v1373_v5 }
  0x68   :  { %v661_v11 = vrot.slane %v660_v33, 1  ;;  %v691_v26 = vrot.slane %v684_v43, %v1140_v19  ;;  %v550_v37 = vmul.f32 0.6931472, %v1036_v29  ;;  %v666_v56 = vrot.slane %v665_v8, 2  ;;  %v1822_v29 = vld [vmem:[#allocation3_spill] sm:$0xff] }
  0x69   :  { %v673_v50 = vrot.slane %v672_v57, 2  ;;  %v695_v51 = vrot.slane %v684_v43, %v1143_v20  ;;  %v1574_v9 = vadd.f32 %v548_v17, %v1309_v62  ;;  %v680_v44 = vrot.slane %v679_v18, 2  ;;  %v1820_v17 = vld [vmem:[#allocation2_spill] sm:$0xff] }
  0x6a   :  { %v1038_v30 = vpop.eup %1037  ;;  %v1576_v31 = vadd.f32 %v661_v11, %v660_v33  ;;  %v699_v59 = vrot.slane %v685_v46, %v1140_v19  ;;  %v667_v15 = vadd.f32 %v666_v56, %v665_v8  ;;  %v703_v5 = vrot.slane %v685_v46, %v1143_v20 }
  0x6b   :  { %v552_v1 = vmul.f32 0.6931472, %v1038_v30  ;;  %v674_v48 = vadd.f32 %v673_v50, %v672_v57  ;;  %v1581_v25 = vadd.f32 %v550_v37, %v1325_v36  ;;  %v681_v61 = vadd.f32 %v680_v44, %v679_v18  ;;  %v1819_v36 = vld [vmem:[#allocation16_spill] sm:$0xff]  ;;  %v1824_v30 = vld [vmem:[#allocation6_spill] sm:$0xff]  ;;  %v1825_v44 = vld [vmem:[#allocation7_spill] sm:$0xff] }
  0x6c   :  { %v707_v2 = vrot.slane %v686_v41, %v1140_v19  ;;  %v711_v34 = vrot.slane %v686_v41, %v1143_v20  ;;  %v668_v62 = vrot.slane %v667_v15, 1  ;;  %v715_v24 = vrot.slane %v687_v52, %v1140_v19  ;;  %v1821_v57 = vld [vmem:[#allocation4_spill] sm:$0xff] }
  0x6d   :  { %v675_v45 = vrot.slane %v674_v48, 1  ;;  %v719_v49 = vrot.slane %v687_v52, %v1143_v20  ;;  %v1588_v10 = vadd.f32 %v552_v1, %v1818_v58  ;;  %v682_v43 = vrot.slane %v681_v61, 1 }
  0x6e   :  { %v1040_v16 = vpop.eup %1039  ;;  %vm720_vm7 = vcmp.eq.s32.totalorder %v1122_v12, %v691_v26  ;;  %vm721_vm8 = vcmp.eq.s32.totalorder %v1122_v12, %v695_v51  ;;  %v1595_v0 = vadd.f32 %v668_v62, %v667_v15  ;;  %vm722_vm9 = vcmp.eq.s32.totalorder %v1376_v7, %v691_v26 }
  0x6f   :  { %v1593_v21 = vmul.f32 %v1040_v16, %v1819_v36  ;;  %vm723_vm10 = vcmp.eq.s32.totalorder %v1376_v7, %v695_v51  ;;  %v1599_v38 = vadd.f32 %v675_v45, %v674_v48  ;;  %v1601_v27 = vadd.f32 %v682_v43, %v681_v61  ;;  %v1823_v51 = vld [vmem:[#allocation5_spill] sm:$0xff] }
  0x70   :  { %vm724_vm11 = vcmp.eq.s32.totalorder %v1122_v12, %v699_v59  ;;  %vm725_vm12 = vcmp.eq.s32.totalorder %v1122_v12, %v703_v5  ;;  %vm726_vm13 = vcmp.eq.s32.totalorder %v1376_v7, %v699_v59  ;;  %vm727_vm14 = vcmp.eq.s32.totalorder %v1376_v7, %v703_v5 }
  0x71   :  { %v166_v33 = vmul.f32 %v1593_v21, %v1593_v21  ;;  %vm728_vm15 = vcmp.eq.s32.totalorder %v1122_v12, %v707_v2  ;;  %vm729_vm0 = vcmp.eq.s32.totalorder %v1122_v12, %v711_v34  ;;  %vm730_vm1 = vcmp.eq.s32.totalorder %v1376_v7, %v707_v2 }
  0x72   :  { %vm731_vm2 = vcmp.eq.s32.totalorder %v1376_v7, %v711_v34  ;;  %vm732_vm3 = vcmp.eq.s32.totalorder %v1122_v12, %v715_v24  ;;  %vm733_vm4 = vcmp.eq.s32.totalorder %v1122_v12, %v719_v49  ;;  %vm734_vm5 = vcmp.eq.s32.totalorder %v1376_v7, %v715_v24 }
  0x73   :  { %v1614_v46 = vadd.f32 1.0, %v166_v33  ;;  %vm735_vm6 = vcmp.eq.s32.totalorder %v1376_v7, %v719_v49  ;;  %v736_v8 = vsel %vm720_vm7, %v1820_v17, 0.0  ;;  %v737_v18 = vsel %vm721_vm8, %v1821_v57, 0.0 }
  0x74   :  { %v738_v11 = vsel %vm722_vm9, %v1822_v29, 0.0  ;;  %v739_v41 = vsel %vm723_vm10, %v1106_v4, 0.0  ;;  %v740_v37 = vsel %vm724_vm11, %v1127_v13, 0.0  ;;  %v741_v56 = vsel %vm725_vm12, %v1152_v35, 0.0 }
  0x75   :  { %1041 = vrsqrt.f32 %v1614_v46  ;;  %v173_v52 = vand.u32 2147483648, %v1614_v46  ;;  %v742_v26 = vsel %vm726_vm13, %v1132_v14, 0.0  ;;  %v743_v4 = vsel %vm727_vm14, %v1158_v39, 0.0 }
  0x76   :  { %v744_v50 = vsel %vm728_vm15, %v1163_v40, 0.0  ;;  %v745_v13 = vsel %vm729_vm0, %v1173_v47, 0.0  ;;  %v746_v35 = vsel %vm730_vm1, %v1823_v51, 0.0  ;;  %v747_v14 = vsel %vm731_vm2, %v1824_v30, 0.0 }
  0x77   :  { %v748_v39 = vsel %vm732_vm3, %v1825_v44, 0.0  ;;  %v749_v40 = vsel %vm733_vm4, %v1242_v6, 0.0  ;;  %v750_v47 = vsel %vm734_vm5, %v1188_v53, 0.0  ;;  %v751_v59 = vsel %vm735_vm6, %v1247_v60, 0.0 }
  0x78   :  { %v752_v1 = vadd.f32 %v738_v11, %v736_v8  ;;  %v759_v15 = vadd.f32 %v739_v41, %v737_v18  ;;  %v766_v48 = vadd.f32 %v742_v26, %v740_v37  ;;  %v773_v5 = vadd.f32 %v743_v4, %v741_v56 }
  0x79   :  { %v780_v61 = vadd.f32 %v746_v35, %v744_v50  ;;  %v787_v2 = vadd.f32 %v747_v14, %v745_v13  ;;  %vm170_vm7 = vcmp.eq.f32.partialorder %v1614_v46, inf  ;;  %v794_v45 = vadd.f32 %v750_v47, %v748_v39 }
  0x7a   :  { %v753_v34 = vrot.slane %v752_v1, 4  ;;  %v760_v62 = vrot.slane %v759_v15, 4  ;;  %v801_v6 = vadd.f32 %v751_v59, %v749_v40  ;;  %vm172_vm8 = vcmp.eq.f32.partialorder %v1614_v46, 0.0 }
  0x7b   :  { %v767_v24 = vrot.slane %v766_v48, 4  ;;  %v774_v53 = vrot.slane %v773_v5, 4  ;;  %v781_v16 = vrot.slane %v780_v61, 4  ;;  %v788_v58 = vrot.slane %v787_v2, 4 }
  0x7c   :  { %v754_v7 = vadd.f32 %v753_v34, %v752_v1  ;;  %v761_v60 = vadd.f32 %v760_v62, %v759_v15  ;;  %v795_v49 = vrot.slane %v794_v45, 4  ;;  %v802_v43 = vrot.slane %v801_v6, 4 }
  0x7d   :  { %v768_v36 = vadd.f32 %v767_v24, %v766_v48  ;;  %v775_v33 = vadd.f32 %v774_v53, %v773_v5  ;;  %v782_v17 = vadd.f32 %v781_v16, %v780_v61  ;;  %v789_v8 = vadd.f32 %v788_v58, %v787_v2 }
  0x7e   :  { %v755_v57 = vrot.slane %v754_v7, 2  ;;  %v762_v18 = vrot.slane %v761_v60, 2  ;;  %v796_v29 = vadd.f32 %v795_v49, %v794_v45  ;;  %v803_v11 = vadd.f32 %v802_v43, %v801_v6 }
  0x7f   :  { %v769_v41 = vrot.slane %v768_v36, 2  ;;  %v776_v37 = vrot.slane %v775_v33, 2  ;;  %v783_v56 = vrot.slane %v782_v17, 2  ;;  %v790_v26 = vrot.slane %v789_v8, 2 }
  0x80   :  { %v756_v4 = vadd.f32 %v755_v57, %v754_v7  ;;  %v763_v50 = vadd.f32 %v762_v18, %v761_v60  ;;  %v797_v13 = vrot.slane %v796_v29, 2  ;;  %v804_v51 = vrot.slane %v803_v11, 2  ;;  %v1826_v18 = vld [vmem:[#allocation12_spill] sm:$0xff] }
  0x81   :  { %v770_v35 = vadd.f32 %v769_v41, %v768_v36  ;;  %v777_v30 = vadd.f32 %v776_v37, %v775_v33  ;;  %v784_v14 = vadd.f32 %v783_v56, %v782_v17  ;;  %v791_v44 = vadd.f32 %v790_v26, %v789_v8 }
  0x82   :  { %v1042_v39 = vpop.eup %1041  ;;  %v757_v40 = vrot.slane %v756_v4, 1  ;;  %v764_v47 = vrot.slane %v763_v50, 1  ;;  %v798_v59 = vadd.f32 %v797_v13, %v796_v29  ;;  %v805_v1 = vadd.f32 %v804_v51, %v803_v11 }
  0x83   :  { %v169_v15 = vmul.f32 %v1042_v39, %v1614_v46  ;;  %v771_v48 = vrot.slane %v770_v35, 1  ;;  %v778_v5 = vrot.slane %v777_v30, 1  ;;  %v785_v61 = vrot.slane %v784_v14, 1 }
  0x84   :  { %v758_v2 = vadd.f32 %v757_v40, %v756_v4  ;;  %v765_v34 = vadd.f32 %v764_v47, %v763_v50  ;;  %v792_v62 = vrot.slane %v791_v44, 1  ;;  %v799_v45 = vrot.slane %v798_v59, 1 }
  0x85   :  { %v171_v6 = vsel %vm170_vm7, %v1614_v46, %v169_v15  ;;  %v772_v24 = vadd.f32 %v771_v48, %v770_v35  ;;  %v779_v53 = vadd.f32 %v778_v5, %v777_v30  ;;  %v786_v16 = vadd.f32 %v785_v61, %v784_v14  ;;  %v1829_v15 = vld [vmem:[#allocation15_spill] sm:$0xff] }
  0x86   :  { %v174_v58 = vsel %vm172_vm8, %v173_v52, %v171_v6  ;;  %v793_v7 = vadd.f32 %v792_v62, %v791_v44  ;;  %v800_v60 = vadd.f32 %v799_v45, %v798_v59  ;;  %v806_v49 = vrot.slane %v805_v1, 1  ;;  %v1828_v59 = vld [vmem:[#allocation14_spill] sm:$0xff] }
  0x87   :  { %v175_v43 = vadd.f32 1.0, %v174_v58  ;;  %v808_v36 = vsub.f32 %v1538_v23, %v1553_v32  ;;  %v809_v33 = vsub.f32 %v1545_v55, %v1558_v42  ;;  %v810_v17 = vsub.f32 %v1548_v22, %v1561_v3  ;;  %v1827_v3 = vld [vmem:[#allocation13_spill] sm:$0xff] }
  0x88   :  { %v807_v8 = vadd.f32 %v806_v49, %v805_v1  ;;  %v811_v57 = vsub.f32 %v1551_v54, %v1566_v28  ;;  %v812_v46 = vsub.f32 %v1564_v63, %v1576_v31  ;;  %v813_v52 = vsub.f32 %v1574_v9, %v1595_v0 }
  0x89   :  { %1043 = vrcp.f32 %v175_v43  ;;  %v814_v32 = vsub.f32 %v1581_v25, %v1599_v38  ;;  %v815_v42 = vsub.f32 %v1588_v10, %v1601_v27  ;;  %v818_v29 = vrot.slane %v1826_v18, 1 }
  0x8a   :  { %v819_v11 = vrot.slane %v1827_v3, 1  ;;  %v820_v41 = vrot.slane %v1826_v18, 2  ;;  %v821_v28 = vrot.slane %v1827_v3, 2  ;;  %v822_v31 = vrot.slane %v1826_v18, 3 }
  0x8b   :  { %v823_v37 = vrot.slane %v1827_v3, 3  ;;  %v832_v0 = vmul.f32 %v808_v36, %v1826_v18  ;;  %v833_v56 = vmul.f32 %v809_v33, %v1827_v3  ;;  %v834_v38 = vmul.f32 %v818_v29, %v810_v17 }
  0x8c   :  { %v835_v26 = vmul.f32 %v819_v11, %v811_v57  ;;  %v836_v4 = vmul.f32 %v820_v41, %v812_v46  ;;  %v837_v27 = vmul.f32 %v821_v28, %v813_v52  ;;  %v838_v50 = vmul.f32 %v822_v31, %v814_v32  ;;  %v1723_v41 = vld [vmem:[%s1779_s4] sm:$0x3] }
  0x8d   :  { %v839_v13 = vmul.f32 %v823_v37, %v815_v42  ;;  %v840_v51 = vsub.f32 %v1538_v23, %v758_v2  ;;  %v841_v35 = vsub.f32 %v1545_v55, %v765_v34  ;;  %v842_v30 = vsub.f32 %v1548_v22, %v772_v24 }
  0x8e   :  { %v843_v14 = vsub.f32 %v1551_v54, %v779_v53  ;;  %v844_v44 = vsub.f32 %v1564_v63, %v786_v16  ;;  %v845_v39 = vsub.f32 %v1574_v9, %v793_v7  ;;  %v846_v40 = vsub.f32 %v1581_v25, %v800_v60 }
  0x8f   :  { %v847_v47 = vsub.f32 %v1588_v10, %v807_v8  ;;  %v850_v1 = vrot.slane %v1828_v59, 1  ;;  %v851_v48 = vrot.slane %v1829_v15, 1  ;;  %v852_v23 = vrot.slane %v1828_v59, 2 }
  0x90   :  { %v853_v55 = vrot.slane %v1829_v15, 2  ;;  %v854_v22 = vrot.slane %v1828_v59, 3  ;;  %v855_v54 = vrot.slane %v1829_v15, 3  ;;  %v864_v63 = vmul.f32 %v840_v51, %v1828_v59 }
  0x91   :  { %v865_v9 = vmul.f32 %v841_v35, %v1829_v15  ;;  %v866_v5 = vmul.f32 %v850_v1, %v842_v30  ;;  %v867_v25 = vmul.f32 %v851_v48, %v843_v14  ;;  %v868_v61 = vmul.f32 %v852_v23, %v844_v44 }
  0x92   :  { %v869_v10 = vmul.f32 %v853_v55, %v845_v39  ;;  %v870_v2 = vmul.f32 %v854_v22, %v846_v40  ;;  %v871_v34 = vmul.f32 %v855_v54, %v847_v47  ;;  %v872_v62 = vadd.f32 %v864_v63, %v832_v0 }
  0x93   :  { %v873_v45 = vadd.f32 %v865_v9, %v833_v56  ;;  %v874_v6 = vadd.f32 %v866_v5, %v834_v38  ;;  %v875_v24 = vadd.f32 %v867_v25, %v835_v26  ;;  %v876_v53 = vadd.f32 %v868_v61, %v836_v4 }
  0x94   :  { %v877_v16 = vadd.f32 %v869_v10, %v837_v27  ;;  %v878_v58 = vadd.f32 %v870_v2, %v838_v50  ;;  %v879_v7 = vadd.f32 %v871_v34, %v839_v13  ;;  %vm889_vm9 = vcmask 1041409  }
  0x95   :  { %v888_v60 = vrot.slane %v874_v6, 7  ;;  %v891_v49 = vrot.slane %v876_v53, 6  ;;  %vm892_vm10 = vcmask 1042434   ;;  %vm895_vm11 = vcmask 1043459  }
  0x96   :  { %v1044_v43 = vpop.eup %1043  ;;  %v894_v36 = vrot.slane %v878_v58, 5  ;;  %v897_v33 = vrot.slane %v875_v24, 7  ;;  %v899_v17 = vrot.slane %v877_v16, 6  ;;  %v901_v8 = vrot.slane %v879_v7, 5  ;;  %v1838_v7 = vld [vmem:[#allocation9_spill] sm:$0xff] }
  0x97   :  { %v177_v57 = vmul.f32 %v1044_v43, %v1593_v21  ;;  %v890_v46 = vsel %vm889_vm9, %v888_v60, %v872_v62  ;;  %vm905_vm12 = vcmask 1043456   ;;  %vm51_vm13 = vcmp.gt.f32.partialorder %v1723_v41, 0.0 }
  0x98   :  { %v893_v52 = vsel %vm892_vm10, %v891_v49, %v890_v46  ;;  %v898_v32 = vsel %vm889_vm9, %v897_v33, %v873_v45  ;;  %v1051_v50 = vmov 0   ;;  %v925_v15 = vrot.slane %v1723_v41, %v1140_v19  ;;  %v1834_v45 = vld [vmem:[#allocation10_spill] sm:$0xff] }
  0x99   :  { %v178_v42 = vmul.f32 %v177_v57, %v177_v57  ;;  %v896_v18 = vsel %vm895_vm11, %v894_v36, %v893_v52  ;;  %v900_v29 = vsel %vm892_vm10, %v899_v17, %v898_v32  ;;  %v52_v13 = vsel %vm51_vm13, 1, %v1051_v50  ;;  %v1839_v52 = vld [vmem:[#allocation17_spill] sm:$0xff] }
  0x9a   :  { %v902_v3 = vsel %vm895_vm11, %v901_v8, %v900_v29  ;;  %v906_v11 = vsel %vm905_vm12, %v896_v18, 0.0  ;;  %v56_v39 = vrot.slane %v52_v13, %v1140_v19  ;;  %v60_v47 = vrot.slane %v52_v13, %v1143_v20 }
  0x9b   :  { %v179_v28 = vmul.f32 0.11111111, %v178_v42  ;;  %v907_v31 = vrot.slane %v906_v11, 4  ;;  %v913_v37 = vsel %vm905_vm12, %v902_v3, 0.0  ;;  %v929_v23 = vrot.slane %v1723_v41, %v1143_v20 }
  0x9c   :  { %v914_v0 = vrot.slane %v913_v37, 4  ;;  %vm1732_vm14 = vcmp.ne.s32.totalorder %v56_v39, 0  ;;  %vm1736_vm15 = vcmp.ne.s32.totalorder %v60_v47, 0  ;;  %v1835_v24 = vlaneseq }
  0x9d   :  { %v180_v56 = vadd.f32 -0.14285715, %v179_v28  ;;  %v908_v21 = vadd.f32 %v907_v31, %v906_v11  ;;  %v1052_v43 = vmov 286326784   ;;  %v1840_v31 = vld [vmem:[#allocation8_spill] sm:$0xff] }
  0x9e   :  { %v915_v38 = vadd.f32 %v914_v0, %v913_v37  ;;  %vm1746_vm0 = vcmp.lt.s32.totalorder %v1835_v24, 256  ;;  %v214_v36 = vunpack.c.l.s4 %v1052_v43  ;;  %v1841_v0 = vsub.s32 6, %v1122_v12 }
  0x9f   :  { %v181_v26 = vmul.f32 %v180_v56, %v178_v42  ;;  %v909_v4 = vrot.slane %v908_v21, 2 }
  0xa0   :  { %v916_v27 = vrot.slane %v915_v38, 2 }
  0xa1   :  { %v182_v51 = vadd.f32 0.2, %v181_v26  ;;  %v910_v35 = vadd.f32 %v909_v4, %v908_v21 }
  0xa2   :  { %v917_v30 = vadd.f32 %v916_v27, %v915_v38 }
  0xa3   :  { %v183_v14 = vmul.f32 %v182_v51, %v178_v42  ;;  %v911_v44 = vrot.slane %v910_v35, 1 }
  0xa4   :  { %v918_v40 = vrot.slane %v917_v30, 1 }
  0xa5   :  { %v184_v59 = vadd.f32 -0.33333334, %v183_v14  ;;  %v912_v1 = vadd.f32 %v911_v44, %v910_v35 }
  0xa6   :  { %v919_v48 = vadd.f32 %v918_v40, %v917_v30 }
  0xa7   :  { %v185_v55 = vmul.f32 %v184_v59, %v178_v42  ;;  %v920_v22 = vmul.f32 0.25, %v912_v1 }
  0xa8   :  { %v921_v63 = vmul.f32 0.25, %v919_v48 }
  0xa9   :  { %v186_v5 = vadd.f32 1.0, %v185_v55  ;;  %v932_v25 = vmul.f32 %v925_v15, %v920_v22 }
  0xaa   :  { %v933_v61 = vmul.f32 %v929_v23, %v921_v63 }
  0xab   :  { %v187_v10 = vmul.f32 %v186_v5, %v177_v57  ;;  %v934_v19 = vsel %vm1732_vm14, %v932_v25, 0.0  ;;  %v215_v57 = vunpack.c.0.s8 %v214_v36 }
  0xac   :  { %v935_v20 = vsel %vm1736_vm15, %v933_v61, 0.0 }
  0xad   :  { %v188_v2 = vmul.f32 8.0, %v187_v10  ;;  %v938_v34 = vcombine.low %v934_v19, %v935_v20  ;;  %v218_v42 = vsub.s32 %v215_v57, %v1122_v12 }
  0xaf   :  { %v189_v62 = vmul.f32 0.40528473, %v188_v2  ;;  %v945_v6 = vrot.slane %v938_v34, %v1834_v45  ;;  %v219_v3 = vrot.slane %v1723_v41, %v218_v42 }
  0xb1   :  { %v190_v16 = vmul.f32 %v189_v62, %v188_v2  ;;  %v952_v58 = vrot.slane %v945_v6, %v1834_v45 }
  0xb3   :  { %v191_v60 = vsub.f32 %v190_v16, %v1838_v7  ;;  %954 = vst.msk [vmem:[%s1780_s6] sm:$0x3] %vm1746_vm0, %v952_v58 }
  0xb5   :  { %v192_v49 = vadd.f32 1.0000001, %v191_v60 }
  0xb7   :  { %1045 = vrcp.f32 %v192_v49 }
  0xc4   :  { %v1046_v33 = vpop.eup %1045 }
  0xc5   :  { %v194_v17 = vmul.f32 %v1046_v33, %v190_v16 }
  0xc7   :  { %v201_v8 = vmul.f32 %v194_v17, %v190_v16 }
  0xc9   :  { %v968_v46 = vrot.slane %v201_v8, 10 }
  0xcb   :  { %v206_v32 = vadd.f32 %v968_v46, %v1839_v52 }
  0xcd   :  { %v208_v18 = vrot.slane %v206_v32, 6 }
  0xcf   :  { %v210_v29 = vsub.f32 %v1838_v7, %v208_v18 }
  0xd1   :  { %v211_v11 = vsub.f32 1.0, %v210_v29 }
  0xd3   :  { %v221_v28 = vmul.f32 %v219_v3, %v211_v11 }
  0xd5   :  { %v226_v37 = vrot.slane %v221_v28, %v1840_v31  ;;  %v230_v56 = vrot.slane %v221_v28, %v1841_v0 }
  0xd7   :  { %v233_v21 = vsel %vm1732_vm14, %v226_v37, 0.0  ;;  %v234_v38 = vsel %vm1736_vm15, %v230_v56, 0.0 }
  0xd8   :  { %v237_v26 = vcombine.low %v233_v21, %v234_v38 }
  0xda   :  { %v244_v4 = vrot.slane %v237_v26, %v1834_v45 }
  0xdc   :  { %v251_v27 = vrot.slane %v244_v4, %v1834_v45 }
  0xde   :  { %257 = vst.msk [vmem:[%s1781_s5] sm:$0x3] %vm1746_vm0, %v251_v27 }

</bundles_post_ra>
